<compile_context>
chip_gen: v6e
topology: v6e:2x2x1
jax: 0.10.0
libtpu: 0.0.40
codegen_flags: <defaults>
</compile_context>

<pallas_src>
import functools

import jax
import jax.numpy as jnp
from jax.experimental import pallas as pl
from jax.experimental.pallas import tpu as pltpu


_HALF_LOG_2PI = 0.9189385332046727  # 0.5 * log(2*pi)


def mlp_pi_fc_kernel(obs_ref, eps_ref, w1_ref, b1_ref, w2_ref, b2_ref,
                     wh_ref, bh_ref, act_ref, lp_ref, *, ac_dim):
    """Feature-major kernel: the batch dimension rides the 128-lane axis.

    obs_ref : [ob_dim,    tb]  (bf16)      eps_ref : [ac_dim, tb] (f32)
    w*_ref  : PyTorch-native [out, in] (bf16), b*_ref : [out, 1] (f32)
    act_ref : [ac_dim, tb] (f32)           lp_ref  : [1, tb]      (f32)
    """
    compute_dt = w1_ref.dtype

    x = obs_ref[...]

    # fc trunk (n_layers = 2): h = relu(W @ x + b), batch on lanes.
    h = jnp.dot(w1_ref[...], x, preferred_element_type=jnp.float32) + b1_ref[...]
    h = jnp.maximum(h, 0.0).astype(compute_dt)
    h = jnp.dot(w2_ref[...], h, preferred_element_type=jnp.float32) + b2_ref[...]
    h = jnp.maximum(h, 0.0).astype(compute_dt)

    # Fused heads: one matmul producing [mu ; log_sigma] stacked on sublanes.
    head = jnp.dot(wh_ref[...], h, preferred_element_type=jnp.float32) + bh_ref[...]
    mu = head[:ac_dim, :]
    log_sigma = jnp.clip(head[ac_dim:, :], -20.0, 2.0)
    sigma = jnp.exp(log_sigma)

    # rsample: x_t = mu + sigma * eps with externally supplied N(0, 1) noise.
    eps = eps_ref[...]
    x_t = mu + sigma * eps
    action = jnp.tanh(x_t)

    # Normal(mu, sigma).log_prob(x_t) = -0.5*eps^2 - log_sigma - 0.5*log(2*pi)
    # tanh correction: - log(clamp(1 - action^2, min=1e-6))   (matches Torch clamp)
    lp_elem = (-0.5 * (eps * eps) - log_sigma - jnp.float32(_HALF_LOG_2PI)
               - jnp.log(jnp.maximum(1.0 - action * action, 1e-6)))
    lp = jnp.sum(lp_elem, axis=0, keepdims=True)   # reduce over features (sublanes)

    # Two direct, sublane-aligned, lane-dense stores — no lane concat, no masked vst.
    act_ref[...] = action
    lp_ref[...] = lp


def prepare_params(params, *, matmul_dtype=jnp.bfloat16):
    """One-time parameter prep (hoisted out of the per-call forward).

    params: (w1, b1, w2, b2, wmu, bmu, wls, bls), weights in PyTorch-native
    [out, in] layout, biases [out] (or [out, 1]).
    Returns (w1, b1, w2, b2, wh, bh) with weights cast to `matmul_dtype`,
    biases as f32 [out, 1] columns, and the mu/log_sigma heads fused.
    """
    w1, b1, w2, b2, wmu, bmu, wls, bls = params

    def col(b):
        return jnp.asarray(b, jnp.float32).reshape(-1, 1)

    cast = lambda w: jnp.asarray(w, matmul_dtype)
    wh = jnp.concatenate([wmu, wls], axis=0)            # [2*ac_dim, size]
    bh = jnp.concatenate([col(bmu), col(bls)], axis=0)  # [2*ac_dim, 1]
    return (cast(w1), col(b1), cast(w2), col(b2), cast(wh), bh)


def mlp_pi_fc_forward(obs, eps, prepped, *, block_b=1024, single_tile_max=4096):
    """Stochastic forward pass (deterministic=False, with_logprob=True).

    obs: [B, ob_dim] f32, eps: [B, ac_dim] ~ N(0,1) f32.
    Returns (action [B, ac_dim] f32, log_prob [B] f32).
    """
    # TODO(synk): deterministic=True / with_logprob=False branches are trivial
    # wrapper-level variants (tanh(mu) only) and are not kernelized here.
    w1, b1, w2, b2, wh, bh = prepped
    B, ob_dim = obs.shape
    ac_dim = eps.shape[1]
    size = w1.shape[0]
    assert wh.shape == (2 * ac_dim, size)

    # Feature-major: batch on the 128-lane axis, features on sublanes.
    obs_t = jnp.asarray(obs, w1.dtype).T          # [ob_dim, B] (bf16 matmul operand)
    eps_t = jnp.asarray(eps, jnp.float32).T       # [ac_dim, B] (f32 epilogue operand)

    if B <= single_tile_max:
        tb = B                      # one block == full array extent (always legal)
        grid_b = 1
    else:
        tb = block_b                # lane-axis tile: must be a multiple of 128
        assert tb % 128 == 0
        grid_b = pl.cdiv(B, tb)     # ragged last block; OOB input columns discarded
    padded_b = grid_b * tb          # only the (tiny) outputs are rounded up

    def batch_spec(feat):
        return pl.BlockSpec((feat, tb), lambda i: (0, i))

    def const_spec(shape):
        return pl.BlockSpec(shape, lambda i: (0, 0))   # weights stay VMEM-resident

    act_t, lp_t = pl.pallas_call(
        functools.partial(mlp_pi_fc_kernel, ac_dim=ac_dim),
        out_shape=(jax.ShapeDtypeStruct((ac_dim, padded_b), jnp.float32),
                   jax.ShapeDtypeStruct((1, padded_b), jnp.float32)),
        grid=(grid_b,),
        in_specs=[batch_spec(ob_dim), batch_spec(ac_dim),
                  const_spec(w1.shape), const_spec(b1.shape),
                  const_spec(w2.shape), const_spec(b2.shape),
                  const_spec(wh.shape), const_spec(bh.shape)],
        out_specs=(batch_spec(ac_dim), batch_spec(1)),
        compiler_params=pltpu.CompilerParams(
            dimension_semantics=("parallel",)),
    )(obs_t, eps_t, w1, b1, w2, b2, wh, bh)

    action = act_t[:, :B].T          # back to batch-major [B, ac_dim]
    log_prob = lp_t[0, :B]
    return action, log_prob


def init_params(key, ob_dim, ac_dim, size):
    """nn.Linear default init U(-1/sqrt(fan_in), 1/sqrt(fan_in)); weights [out, in]."""
    def linear(k, fan_in, fan_out):
        kw, kb = jax.random.split(k)
        bound = 1.0 / jnp.sqrt(jnp.float32(fan_in))
        w = jax.random.uniform(kw, (fan_out, fan_in), jnp.float32, -bound, bound)
        b = jax.random.uniform(kb, (fan_out,), jnp.float32, -bound, bound)
        return w, b

    k1, k2, k3, k4 = jax.random.split(key, 4)
    w1, b1 = linear(k1, ob_dim, size)
    w2, b2 = linear(k2, size, size)
    wmu, bmu = linear(k3, size, ac_dim)
    wls, bls = linear(k4, size, ac_dim)
    return (w1, b1, w2, b2, wmu, bmu, wls, bls)


if __name__ == "__main__":
    B, ob_dim, ac_dim, size = 8, 16, 8, 32

    key = jax.random.PRNGKey(0)
    k_params, k_obs, k_eps = jax.random.split(key, 3)

    raw_params = init_params(k_params, ob_dim, ac_dim, size)
    prepped = prepare_params(raw_params)

    obs = jax.random.normal(k_obs, (B, ob_dim), dtype=jnp.float32)
    eps = jax.random.normal(k_eps, (B, ac_dim), dtype=jnp.float32)  # rsample noise

    action, log_prob = mlp_pi_fc_forward(obs, eps, prepped)
    jax.block_until_ready((action, log_prob))

    # Pure-JAX reference: same math, same bf16 operand rounding as the kernel's MXU path.
    w1, b1, w2, b2, wmu, bmu, wls, bls = raw_params
    r = lambda a: jnp.asarray(a, jnp.bfloat16).astype(jnp.float32)  # bf16 round-trip
    h = jnp.maximum(r(obs) @ r(w1).T + b1, 0.0)
    h = jnp.maximum(r(h) @ r(w2).T + b2, 0.0)
    h = r(h)
    mu_ref = h @ r(wmu).T + bmu
    ls_ref = jnp.clip(h @ r(wls).T + bls, -20.0, 2.0)
    x_t = mu_ref + jnp.exp(ls_ref) * eps
    a_ref = jnp.tanh(x_t)
    lp_ref = jnp.sum(-0.5 * eps * eps - ls_ref - 0.5 * jnp.log(2.0 * jnp.pi), axis=1)
    lp_ref = lp_ref - jnp.sum(jnp.log(jnp.maximum(1.0 - a_ref * a_ref, 1e-6)), axis=1)

    assert action.shape == (B, ac_dim)
    assert log_prob.shape == (B,)
    assert bool(jnp.all(jnp.isfinite(action))) and bool(jnp.all(jnp.isfinite(log_prob)))
    assert bool(jnp.allclose(action, a_ref, atol=1e-4, rtol=1e-4))
    assert bool(jnp.allclose(log_prob, lp_ref, atol=1e-3, rtol=1e-3))

    # Exercise the multi-tile path with a ragged last block (no input padding) and
    # check it agrees with the single-tile path.
    B2 = 300
    obs2 = jax.random.normal(jax.random.PRNGKey(1), (B2, ob_dim), dtype=jnp.float32)
    eps2 = jax.random.normal(jax.random.PRNGKey(2), (B2, ac_dim), dtype=jnp.float32)
    a_one, lp_one = mlp_pi_fc_forward(obs2, eps2, prepped)                       # 1 tile
    a_tiled, lp_tiled = mlp_pi_fc_forward(obs2, eps2, prepped,
                                          block_b=128, single_tile_max=0)        # 3 tiles
    jax.block_until_ready((a_tiled, lp_tiled))
    assert a_tiled.shape == (B2, ac_dim) and lp_tiled.shape == (B2,)
    assert bool(jnp.allclose(a_one, a_tiled, atol=1e-5, rtol=1e-5))
    assert bool(jnp.allclose(lp_one, lp_tiled, atol=1e-4, rtol=1e-4))

    print("KERNEL_OK")
</pallas_src>

<mosaic_0001>
module attributes {stable_mosaic.version = 11 : i64} {
  func.func @mlp_pi_fc_kernel(%arg0: i32, %arg1: memref<16x8xbf16, #tpu.memory_space<vmem>>, %arg2: memref<8x8xf32, #tpu.memory_space<vmem>>, %arg3: memref<32x16xbf16, #tpu.memory_space<vmem>>, %arg4: memref<32x1xf32, #tpu.memory_space<vmem>>, %arg5: memref<32x32xbf16, #tpu.memory_space<vmem>>, %arg6: memref<32x1xf32, #tpu.memory_space<vmem>>, %arg7: memref<16x32xbf16, #tpu.memory_space<vmem>>, %arg8: memref<16x1xf32, #tpu.memory_space<vmem>>, %arg9: memref<8x8xf32, #tpu.memory_space<vmem>>, %arg10: memref<1x8xf32, #tpu.memory_space<vmem>>) attributes {dimension_semantics = [#tpu.dimension_semantics<parallel>], iteration_bounds = array<i64: 1>, scalar_prefetch = 0 : i64, scratch_operands = 0 : i64, tpu.core_type = #tpu.core_type<tc>, window_params = [{transform_indices = @transform_0, window_bounds = array<i64: 16, 8>}, {transform_indices = @transform_1, window_bounds = array<i64: 8, 8>}, {pipeline_mode = #tpu.pipeline_mode<synchronous>, transform_indices = @transform_2, window_bounds = array<i64: 32, 16>}, {pipeline_mode = #tpu.pipeline_mode<synchronous>, transform_indices = @transform_3, window_bounds = array<i64: 32, 1>}, {pipeline_mode = #tpu.pipeline_mode<synchronous>, transform_indices = @transform_4, window_bounds = array<i64: 32, 32>}, {pipeline_mode = #tpu.pipeline_mode<synchronous>, transform_indices = @transform_5, window_bounds = array<i64: 32, 1>}, {pipeline_mode = #tpu.pipeline_mode<synchronous>, transform_indices = @transform_6, window_bounds = array<i64: 16, 32>}, {pipeline_mode = #tpu.pipeline_mode<synchronous>, transform_indices = @transform_7, window_bounds = array<i64: 16, 1>}, {transform_indices = @transform_8, window_bounds = array<i64: 8, 8>}, {transform_indices = @transform_9, window_bounds = array<i64: 1, 8>}]} {
    %c0 = arith.constant 0 : index
    %c0_0 = arith.constant 0 : index
    %0 = vector.load %arg1[%c0, %c0_0] : memref<16x8xbf16, #tpu.memory_space<vmem>>, vector<16x8xbf16>
    %c0_1 = arith.constant 0 : index
    %c0_2 = arith.constant 0 : index
    %1 = vector.load %arg3[%c0_1, %c0_2] : memref<32x16xbf16, #tpu.memory_space<vmem>>, vector<32x16xbf16>
    %cst = arith.constant dense<0.000000e+00> : vector<32x8xf32>
    %2 = tpu.matmul %1, %0, %cst {dimension_numbers = #tpu.dot_dimension_numbers<[1], [0], [0], [1], [0, 0, 1, 1], [], []>} : vector<32x16xbf16>, vector<16x8xbf16>, vector<32x8xf32> -> vector<32x8xf32>
    %c0_3 = arith.constant 0 : index
    %c0_4 = arith.constant 0 : index
    %3 = vector.load %arg4[%c0_3, %c0_4] : memref<32x1xf32, #tpu.memory_space<vmem>>, vector<32x1xf32>
    %4 = vector.broadcast %3 : vector<32x1xf32> to vector<32x8xf32>
    %5 = arith.addf %2, %4 : vector<32x8xf32>
    %cst_5 = arith.constant 0.000000e+00 : f32
    %6 = vector.broadcast %cst_5 : f32 to vector<32x8xf32>
    %7 = arith.maximumf %5, %6 : vector<32x8xf32>
    %8 = arith.truncf %7 : vector<32x8xf32> to vector<32x8xbf16>
    %c0_6 = arith.constant 0 : index
    %c0_7 = arith.constant 0 : index
    %9 = vector.load %arg5[%c0_6, %c0_7] : memref<32x32xbf16, #tpu.memory_space<vmem>>, vector<32x32xbf16>
    %cst_8 = arith.constant dense<0.000000e+00> : vector<32x8xf32>
    %10 = tpu.matmul %9, %8, %cst_8 {dimension_numbers = #tpu.dot_dimension_numbers<[1], [0], [0], [1], [0, 0, 1, 1], [], []>} : vector<32x32xbf16>, vector<32x8xbf16>, vector<32x8xf32> -> vector<32x8xf32>
    %c0_9 = arith.constant 0 : index
    %c0_10 = arith.constant 0 : index
    %11 = vector.load %arg6[%c0_9, %c0_10] : memref<32x1xf32, #tpu.memory_space<vmem>>, vector<32x1xf32>
    %12 = vector.broadcast %11 : vector<32x1xf32> to vector<32x8xf32>
    %13 = arith.addf %10, %12 : vector<32x8xf32>
    %cst_11 = arith.constant 0.000000e+00 : f32
    %14 = vector.broadcast %cst_11 : f32 to vector<32x8xf32>
    %15 = arith.maximumf %13, %14 : vector<32x8xf32>
    %16 = arith.truncf %15 : vector<32x8xf32> to vector<32x8xbf16>
    %c0_12 = arith.constant 0 : index
    %c0_13 = arith.constant 0 : index
    %17 = vector.load %arg7[%c0_12, %c0_13] : memref<16x32xbf16, #tpu.memory_space<vmem>>, vector<16x32xbf16>
    %cst_14 = arith.constant dense<0.000000e+00> : vector<16x8xf32>
    %18 = tpu.matmul %17, %16, %cst_14 {dimension_numbers = #tpu.dot_dimension_numbers<[1], [0], [0], [1], [0, 0, 1, 1], [], []>} : vector<16x32xbf16>, vector<32x8xbf16>, vector<16x8xf32> -> vector<16x8xf32>
    %c0_15 = arith.constant 0 : index
    %c0_16 = arith.constant 0 : index
    %19 = vector.load %arg8[%c0_15, %c0_16] : memref<16x1xf32, #tpu.memory_space<vmem>>, vector<16x1xf32>
    %20 = vector.broadcast %19 : vector<16x1xf32> to vector<16x8xf32>
    %21 = arith.addf %18, %20 : vector<16x8xf32>
    %22 = vector.extract_strided_slice %21 {offsets = [0, 0], sizes = [8, 8], strides = [1, 1]} : vector<16x8xf32> to vector<8x8xf32>
    %23 = vector.extract_strided_slice %21 {offsets = [8, 0], sizes = [8, 8], strides = [1, 1]} : vector<16x8xf32> to vector<8x8xf32>
    %cst_17 = arith.constant -2.000000e+01 : f32
    %cst_18 = arith.constant 2.000000e+00 : f32
    %24 = vector.broadcast %cst_17 : f32 to vector<8x8xf32>
    %25 = arith.maximumf %24, %23 : vector<8x8xf32>
    %26 = vector.broadcast %cst_18 : f32 to vector<8x8xf32>
    %27 = arith.minimumf %26, %25 : vector<8x8xf32>
    %28 = math.exp %27 : vector<8x8xf32>
    %c0_19 = arith.constant 0 : index
    %c0_20 = arith.constant 0 : index
    %29 = vector.load %arg2[%c0_19, %c0_20] : memref<8x8xf32, #tpu.memory_space<vmem>>, vector<8x8xf32>
    %30 = arith.mulf %28, %29 : vector<8x8xf32>
    %31 = arith.addf %22, %30 : vector<8x8xf32>
    %32 = math.tanh %31 : vector<8x8xf32>
    %33 = arith.mulf %29, %29 : vector<8x8xf32>
    %cst_21 = arith.constant -5.000000e-01 : f32
    %34 = vector.broadcast %cst_21 : f32 to vector<8x8xf32>
    %35 = arith.mulf %34, %33 : vector<8x8xf32>
    %36 = arith.subf %35, %27 : vector<8x8xf32>
    %cst_22 = arith.constant 0.918938517 : f32
    %37 = vector.broadcast %cst_22 : f32 to vector<8x8xf32>
    %38 = arith.subf %36, %37 : vector<8x8xf32>
    %39 = arith.mulf %32, %32 : vector<8x8xf32>
    %cst_23 = arith.constant 1.000000e+00 : f32
    %40 = vector.broadcast %cst_23 : f32 to vector<8x8xf32>
    %41 = arith.subf %40, %39 : vector<8x8xf32>
    %cst_24 = arith.constant 9.99999997E-7 : f32
    %42 = vector.broadcast %cst_24 : f32 to vector<8x8xf32>
    %43 = arith.maximumf %41, %42 : vector<8x8xf32>
    %44 = math.log %43 : vector<8x8xf32>
    %45 = arith.subf %38, %44 : vector<8x8xf32>
    %cst_25 = arith.constant dense<0.000000e+00> : vector<8xf32>
    %46 = vector.multi_reduction <add>, %45, %cst_25 [0] : vector<8x8xf32> to vector<8xf32>
    %47 = vector.shape_cast %46 : vector<8xf32> to vector<1x8xf32>
    %c0_26 = arith.constant 0 : index
    %c0_27 = arith.constant 0 : index
    %48 = vector.load %arg9[%c0_26, %c0_27] : memref<8x8xf32, #tpu.memory_space<vmem>>, vector<8x8xf32>
    tpu.vector_store %arg9[%c0_26, %c0_27], %32 {strides = array<i32>} : memref<8x8xf32, #tpu.memory_space<vmem>>, vector<8x8xf32>,
    %c0_28 = arith.constant 0 : index
    %c0_29 = arith.constant 0 : index
    %49 = vector.load %arg10[%c0_28, %c0_29] : memref<1x8xf32, #tpu.memory_space<vmem>>, vector<1x8xf32>
    tpu.vector_store %arg10[%c0_28, %c0_29], %47 {strides = array<i32>} : memref<1x8xf32, #tpu.memory_space<vmem>>, vector<1x8xf32>,
    return
  }
  func.func @transform_0(%arg0: i32) -> (i32, i32) {
    %c0_i32 = arith.constant 0 : i32
    %c0_i32_0 = arith.constant 0 : i32
    return %c0_i32, %arg0 : i32, i32
  }
  func.func @transform_1(%arg0: i32) -> (i32, i32) {
    %c0_i32 = arith.constant 0 : i32
    %c0_i32_0 = arith.constant 0 : i32
    return %c0_i32, %arg0 : i32, i32
  }
  func.func @transform_2(%arg0: i32) -> (i32, i32) {
    %c0_i32 = arith.constant 0 : i32
    %c0_i32_0 = arith.constant 0 : i32
    %c0_i32_1 = arith.constant 0 : i32
    return %c0_i32, %c0_i32_0 : i32, i32
  }
  func.func @transform_3(%arg0: i32) -> (i32, i32) {
    %c0_i32 = arith.constant 0 : i32
    %c0_i32_0 = arith.constant 0 : i32
    %c0_i32_1 = arith.constant 0 : i32
    return %c0_i32, %c0_i32_0 : i32, i32
  }
  func.func @transform_4(%arg0: i32) -> (i32, i32) {
    %c0_i32 = arith.constant 0 : i32
    %c0_i32_0 = arith.constant 0 : i32
    %c0_i32_1 = arith.constant 0 : i32
    return %c0_i32, %c0_i32_0 : i32, i32
  }
  func.func @transform_5(%arg0: i32) -> (i32, i32) {
    %c0_i32 = arith.constant 0 : i32
    %c0_i32_0 = arith.constant 0 : i32
    %c0_i32_1 = arith.constant 0 : i32
    return %c0_i32, %c0_i32_0 : i32, i32
  }
  func.func @transform_6(%arg0: i32) -> (i32, i32) {
    %c0_i32 = arith.constant 0 : i32
    %c0_i32_0 = arith.constant 0 : i32
    %c0_i32_1 = arith.constant 0 : i32
    return %c0_i32, %c0_i32_0 : i32, i32
  }
  func.func @transform_7(%arg0: i32) -> (i32, i32) {
    %c0_i32 = arith.constant 0 : i32
    %c0_i32_0 = arith.constant 0 : i32
    %c0_i32_1 = arith.constant 0 : i32
    return %c0_i32, %c0_i32_0 : i32, i32
  }
  func.func @transform_8(%arg0: i32) -> (i32, i32) {
    %c0_i32 = arith.constant 0 : i32
    %c0_i32_0 = arith.constant 0 : i32
    return %c0_i32, %arg0 : i32, i32
  }
  func.func @transform_9(%arg0: i32) -> (i32, i32) {
    %c0_i32 = arith.constant 0 : i32
    %c0_i32_0 = arith.constant 0 : i32
    return %c0_i32, %arg0 : i32, i32
  }
}

</mosaic_0001>

<bundles_post_ra>
// kernel: tpu_custom_call.1
= control target key start
LH: loop header
LB: loop body
LE: loop exit
PB: predicated region body
PF: predicated region fallthrough
CT: control target
= control target key end

     0   :  { %15 = vsyncpa [#allocation3], 0  ;;  %vm80_vm0 = vcmask 130048   ;;  %v469_v3 = vmov 0   ;;  %s586_s0 = inlined_call_operand.vmem [shape: bf16[16,8], index: 0, kind: input, shape index: {}]   ;;  %s587_s1 = inlined_call_operand.vmem [shape: f32[8,8], index: 1, kind: input, shape index: {}]   ;;  %s588_s2 = inlined_call_operand.vmem [shape: bf16[32,16], index: 2, kind: input, shape index: {}]   ;;  %s589_s3 = inlined_call_operand.vmem [shape: f32[32,1], index: 3, kind: input, shape index: {}]   ;;  %s590_s4 = inlined_call_operand.vmem [shape: bf16[32,32], index: 4, kind: input, shape index: {}]   ;;  %s591_s5 = inlined_call_operand.vmem [shape: f32[32,1], index: 5, kind: input, shape index: {}]   ;;  %s592_s6 = inlined_call_operand.vmem [shape: bf16[16,32], index: 6, kind: input, shape index: {}]   ;;  %s593_s7 = inlined_call_operand.vmem [shape: f32[16,1], index: 7, kind: input, shape index: {}]   ;;  %s594_s8 = inlined_call_operand.hbm [shape: f32[8,8], index: 8, kind: output, shape index: {0}]   ;;  %s595_s9 = inlined_call_operand.hbm [shape: f32[1,8], index: 9, kind: output, shape index: {1}]  }
   0x1   :  { %v413_v0 = vld [vmem:[%s586_s0] sm:$0xff]   ;;  %v415_v2 = vld [vmem:[%s588_s2 + $0x8] sm:$0xff]   ;;  %411 = vset.pattern.permute.xlu0 %v469_v3  ;;  %v42_v4 = vld [vmem:[%s589_s3 + $0x10] sm:$0xff]  ;;  %412 = vset.pattern.permute.xlu1 %v469_v3 }
   0x2   :  { %v414_v1 = vld [vmem:[%s588_s2] sm:$0xff]   ;;  %384 = vmatprep.subr.bf16.mxu0 %v413_v0  ;;  %56 = vperm.xlu0 %411, %v42_v4   ;;  %v43_v6 = vld [vmem:[%s589_s3 + $0x18] sm:$0xff]  ;;  %v41_v7 = vld [vmem:[%s589_s3 + $0x8] sm:$0xff] }
   0x3   :  { %385 = vmatpush3.bf16.msra.mxu0 %v413_v0  ;;  %386 = vmatprep.mubr.msk.bf16.mxu0 %vm80_vm0, %v414_v1  ;;  %v40_v5 = vld [vmem:[%s589_s3] sm:$0xff] }
   0x4   :  { %46 = vperm.xlu1 %412, %v40_v5  }
   0x6   :  { %387 = vmatmul.mubr.msk.bf16.vlgmr.msra.gmra.mxu0 %vm80_vm0, %v415_v2  ;;  %61 = vperm.xlu0 %411, %v43_v6  }
   0x7   :  { %16 = vsyncpa [#allocation5], 0  ;;  %v148_v8 = vld [vmem:[%s591_s5 + $0x10] sm:$0xff]  ;;  %v149_v9 = vld [vmem:[%s591_s5 + $0x18] sm:$0xff]  ;;  %vm180_vm1 = vcmask 261120   ;;  %v470_v34 = vmov 0.0  }
   0x8   :  { %51 = vperm.xlu1 %412, %v41_v7   ;;  %v146_v10 = vld [vmem:[%s591_s5] sm:$0xff]  ;;  %v147_v11 = vld [vmem:[%s591_s5 + $0x8] sm:$0xff]  ;;  %398 = vmatprep.subr.bf16.mxu0 %v470_v34  ;;  %vm471_vm2 = vmmov 0   ;;  %vm323_vm3 = vcmask 64512  }
   0x9   :  { %v245_v12 = vld [vmem:[%s593_s7 + $0x8] sm:$0xff]  ;;  %v244_v13 = vld [vmem:[%s593_s7] sm:$0xff]  ;;  %402 = vmatprep.mubr.msk.bf16.mxu0 %vm471_vm2, %v470_v34 }
   0xa   :  { %162 = vperm.xlu0 %411, %v148_v8   ;;  %v416_v14 = vld [vmem:[%s590_s4] sm:$0xff]   ;;  %v417_v33 = vld [vmem:[%s590_s4 + $0x8] sm:$0xff]  }
   0xb   :  { %394 = vmatprep.mubr.msk.bf16.mxu1 %vm180_vm1, %v416_v14  ;;  %v418_v53 = vld [vmem:[%s592_s6] sm:$0xff]   ;;  %s472_s6 = smov [#allocation2]  }
   0xc   :  { %167 = vperm.xlu1 %412, %v149_v9   ;;  %v309_v1 = vld [vmem:[%s587_s1] sm:$0xff]  ;;  %s340_s16 = sshll.u32 %s472_s6, 4  ;;  %s341_s16 = int_to_ptr.vmem [resolvable:$true] %s340_s16 }
   0xd   :  { %s425_s17 = scalar_lea.vmem %s341_s16, 128  ;;  %p430_p1 = scmp.lt.s32.totalorder %s341_s16, %s341_s16 }
   0xe   :  { %152 = vperm.xlu0 %411, %v146_v10   ;;  %p426_p0 = scmp.ne.s32.totalorder %s341_s16, %s425_s17  ;;  %p431_p2 = scmp.lt.s32.totalorder %s425_s17, %s425_s17 }
  0x10   :  { %157 = vperm.xlu1 %412, %v147_v11   ;;  %p432_p3 = por %p431_p2, %p430_p1 }
  0x12   :  { %253 = vperm.xlu0 %411, %v245_v12   ;;  %p433_p4 = pnand %p432_p3, %p426_p0 }
  0x14   :  { %248 = vperm.xlu1 %412, %v244_v13  }
  0x7d   :  { %v57_v15 = vpop.permute.xlu0 %56 }
  0x7f   :  { %v47_v16 = vpop.permute.xlu1 %46 }
  0x81   :  { %v62_v20 = vpop.permute.xlu0 %61 }
  0x83   :  { %v52_v24 = vpop.permute.xlu1 %51 }
  0x85   :  { %v163_v35 = vpop.permute.xlu0 %162 }
  0x87   :  { %v168_v36 = vpop.permute.xlu1 %167 }
  0x89   :  { %v153_v41 = vpop.permute.xlu0 %152 }
  0x8b   :  { %v158_v43 = vpop.permute.xlu1 %157 }
  0x8d   :  { %v254_v56 = vpop.permute.xlu0 %253 }
  0x8f   :  { %v249_v0 = vpop.permute.xlu1 %248 }
  0xc6   :  { %v388_v17 = vpop.f32.mrf.mxu0 }
  0xc7   :  { %v130_v19 = vadd.f32 %v388_v17, %v57_v15 }
  0xc8   :  { %v121_v18 = vpop.f32.mrf.mxu0 }
  0xc9   :  { %v122_v22 = vadd.f32 %v121_v18, %v47_v16  ;;  %v138_v26 = vmax.f32 %v130_v19, 0.0 }
  0xca   :  { %v389_v21 = vpop.f32.mrf.mxu0 }
  0xcb   :  { %v133_v23 = vadd.f32 %v389_v21, %v62_v20  ;;  %v136_v29 = vmax.f32 %v122_v22, 0.0 }
  0xcc   :  { %v124_v25 = vpop.f32.mrf.mxu0 }
  0xcd   :  { %v139_v27 = vmax.f32 %v133_v23, 0.0  ;;  %v125_v28 = vadd.f32 %v124_v25, %v52_v24 }
  0xcf   :  { %v137_v30 = vmax.f32 %v125_v28, 0.0  ;;  %v141_v31 = vpack.c.bf16 %v139_v27, %v138_v26 }
  0xd1   :  { %v140_v32 = vpack.c.bf16 %v137_v30, %v136_v29  ;;  %390 = vmatprep.subr.bf16.mxu1 %v141_v31 }
  0xd2   :  { %391 = vmatpush3.bf16.msra.mxu1 %v141_v31 }
  0xd3   :  { %392 = vmatprep.subr.bf16.mxu1 %v140_v32 }
  0xd6   :  { %393 = vmatpush3.bf16.msra.mxu1 %v140_v32 }
  0xd9   :  { %395 = vmatmul.mubr.msk.bf16.vlgmr.msra.gmra.mxu1 %vm180_vm1, %v417_v33 }
 0x199   :  { %v396_v37 = vpop.f32.mrf.mxu1 }
 0x19a   :  { %v230_v39 = vadd.f32 %v396_v37, %v163_v35 }
 0x19b   :  { %v221_v38 = vpop.f32.mrf.mxu1 }
 0x19c   :  { %v238_v45 = vmax.f32 %v230_v39, 0.0  ;;  %v222_v46 = vadd.f32 %v221_v38, %v153_v41 }
 0x19d   :  { %v397_v40 = vpop.f32.mrf.mxu1 }
 0x19e   :  { %v233_v42 = vadd.f32 %v397_v40, %v168_v36  ;;  %v236_v51 = vmax.f32 %v222_v46, 0.0 }
 0x19f   :  { %v224_v44 = vpop.f32.mrf.mxu1 }
 0x1a0   :  { %v239_v47 = vmax.f32 %v233_v42, 0.0  ;;  %v225_v48 = vadd.f32 %v224_v44, %v158_v43 }
 0x1a2   :  { %v241_v49 = vpack.c.bf16 %v239_v47, %v238_v45  ;;  %v237_v50 = vmax.f32 %v225_v48, 0.0 }
 0x1a4   :  { %399 = vmatpush3.bf16.msra.mxu0 %v241_v49  ;;  %v240_v52 = vpack.c.bf16 %v237_v50, %v236_v51 }
 0x1a5   :  { %400 = vmatprep.subr.bf16.mxu0 %v470_v34 }
 0x1a8   :  { %401 = vmatpush3.bf16.msra.mxu0 %v240_v52 }
 0x1ab   :  { %403 = vmatmul.mubr.msk.bf16.vlgmr.msra.gmra.mxu0 %vm180_vm1, %v418_v53 }
 0x26b   :  { %v298_v54 = vpop.f32.mrf.mxu0 }
 0x26c   :  { %v299_v2 = vadd.f32 %v298_v54, %v249_v0 }
 0x26d   :  { %v404_v55 = vpop.f32.mrf.mxu0 }
 0x26f   :  { %v301_v57 = vpop.f32.mrf.mxu0 }
 0x270   :  { %v302_v58 = vadd.f32 %v301_v57, %v254_v56 }
 0x271   :  { %v405_v59 = vpop.f32.mrf.mxu0 }
 0x272   :  { %v305_v60 = vmax.f32 %v302_v58, -20.0 }
 0x274   :  { %v306_v61 = vmin.f32 %v305_v60, 2.0 }
 0x276   :  { %v307_v62 = vmul.f32 1.442695, %v306_v61 }
 0x278   :  { %419 = vpow2.f32 %v307_v62 }
 0x285   :  { %v420_v63 = vpop.eup %419 }
 0x286   :  { %v310_v3 = vmul.f32 %v420_v63, %v309_v1 }
 0x288   :  { %v311_v4 = vadd.f32 %v310_v3, %v299_v2 }
 0x28a   :  { %421 = vtanh.f32 %v311_v4 }
 0x297   :  { %v422_v5 = vpop.eup %421 }
 0x298   :  { %v317_v6 = vmul.f32 %v422_v5, %v422_v5  ;;  %331 = vst.msk [vmem:[#allocation2] sm:$0xff] %vm323_vm3, %v422_v5 }
 0x299   :  { %436 = shalt.err (!%p433_p4)
}
 0x29a   :  { %343 = dma.vmem_to_hbm [thread:$0]  %s341_s16, 128, %s594_s8, [#allocation3]   ;;  %v318_v7 = vsub.f32 1.0, %v317_v6  ;;  %v313_v9 = vmul.f32 %v309_v1, %v309_v1  ;;  %vm332_vm4 = vcmask 57344  }
 0x29b   :  { %s473_s18 = smov [#allocation4]  }
 0x29c   :  { %v319_v8 = vmax.f32 %v318_v7, 1e-06  ;;  %v314_v10 = vmul.f32 -0.5, %v313_v9  ;;  %s350_s19 = sshll.u32 %s473_s18, 4  ;;  %s351_s19 = int_to_ptr.vmem [resolvable:$true] %s350_s19 }
 0x29d   :  { %s445_s8 = scalar_lea.vmem %s351_s19, 16  ;;  %s449_s2 = scalar_lea.vmem %s351_s19, 32 }
 0x29e   :  { %423 = vlog2.f32 %v319_v8  ;;  %v315_v11 = vsub.f32 %v314_v10, %v306_v61  ;;  %p446_p5 = scmp.ne.s32.totalorder %s351_s19, %s445_s8  ;;  %p450_p6 = scmp.lt.s32.totalorder %s351_s19, %s351_s19 }
 0x29f   :  { %p451_p7 = scmp.lt.s32.totalorder %s449_s2, %s445_s8 }
 0x2a0   :  { %v373_v13 = vadd.f32 -0.9189385, %v315_v11 }
 0x2a1   :  { %p452_p8 = por %p451_p7, %p450_p6 }
 0x2a3   :  { %p453_p9 = pnand %p452_p8, %p446_p5 }
 0x2ab   :  { %v424_v12 = vpop.eup %423 }
 0x2ac   :  { %v321_v14 = vmul.f32 0.6931472, %v424_v12 }
 0x2ae   :  { %v322_v15 = vsub.f32 %v373_v13, %v321_v14 }
 0x2b0   :  { %v324_v16 = vsel %vm323_vm3, %v322_v15, 0.0 }
 0x2b1   :  { %v325_v17 = vrot.slane %v324_v16, 4 }
 0x2b3   :  { %v326_v18 = vadd.f32 %v325_v17, %v324_v16 }
 0x2b5   :  { %v327_v19 = vrot.slane %v326_v18, 2 }
 0x2b7   :  { %v328_v20 = vadd.f32 %v327_v19, %v326_v18 }
 0x2b9   :  { %v329_v21 = vrot.slane %v328_v20, 1 }
 0x2bb   :  { %v330_v22 = vadd.f32 %v329_v21, %v328_v20 }
 0x2bd   :  { %333 = vst.msk [vmem:[#allocation4] sm:$0x1] %vm332_vm4, %v330_v22 }
 0x2be   :  { %456 = shalt.err (!%p453_p9)
}
 0x2bf   :  { %353 = dma.vmem_to_hbm [thread:$0]  %s351_s19, 16, %s595_s9, [#allocation5]  }
 0x2c0   :  { %465 = dma.done.wait [#allocation3], 128  }
 0x2c1   :  { %466 = vsyncadd [#allocation3], 4294967168 }
 0x2c2   :  { %467 = dma.done.wait [#allocation5], 16  }
 0x2c3   :  { %468 = vsyncadd [#allocation5], 4294967280 }
 0x2c4   :  { %360 = vsyncpa [#allocation3], 1 }
 0x2c5   :  { %361 = vsyncpa [#allocation5], 1 }

</bundles_post_ra>
